<compile_context>
chip_gen: v6e
topology: v6e:2x2x1
jax: 0.10.0
libtpu: 0.0.40
codegen_flags: <defaults>
</compile_context>

<pallas_src>
import math
import functools

import jax
import jax.numpy as jnp
import numpy as np
from jax import lax
from jax.experimental import pallas as pl
from jax.experimental.pallas import tpu as pltpu


NEG_INF = -1e30          # large finite sentinel instead of -inf (no NaN hazard)
LANES = 128              # vreg lane width
VMEM_LIMIT = 64 * 1024 * 1024   # explicit scoped-VMEM budget (review item)


# ---------------------------------------------------------------------------
# Flash attention kernel: grid (B, q_blk, kv_blk), all heads per grid step.
# Inputs are three windows of the fused (3, B, S, D) QKV tensor; the output is
# written directly in (B, S, D) layout (lane-dense D-wide store).
# ---------------------------------------------------------------------------
def _flash_kernel(q_ref, k_ref, v_ref, o_ref, m_ref, l_ref, acc_ref, *,
                  tq, tk, hd, n_heads, past_length, approx_recip):
    qi = pl.program_id(1)
    kj = pl.program_id(2)
    n_kv = pl.num_programs(2)

    @pl.when(kj == 0)
    def _init():
        m_ref[...] = jnp.full_like(m_ref, NEG_INF)
        l_ref[...] = jnp.zeros_like(l_ref)
        acc_ref[...] = jnp.zeros_like(acc_ref)

    q_start = qi * tq
    kv_start = kj * tk
    # Tile contributes at all iff its first column can be attended by the last
    # query row of the tile.
    needed = kv_start <= q_start + (tq - 1) + past_length
    # Tile needs masking iff some element lies above the causal diagonal.
    straddles = kv_start + (tk - 1) > q_start + past_length

    def _lane_fit(x, width):
        # x: (tq, LANES) with identical values across lanes -> (tq, width).
        if width <= LANES:
            return x[:, :width]
        assert width % LANES == 0
        return jnp.tile(x, (1, width // LANES))

    def _process(apply_mask):
        if apply_mask:
            row = q_start + lax.broadcasted_iota(jnp.int32, (tq, tk), 0)
            col = kv_start + lax.broadcasted_iota(jnp.int32, (tq, tk), 1)
            keep = col <= row + past_length
        for h in range(n_heads):                       # static unroll over heads
            hs = slice(h * hd, (h + 1) * hd)
            qh = q_ref[0, 0, :, hs]                    # (tq, hd)
            kh = k_ref[0, 0, :, hs]                    # (tk, hd)
            # contract last axes — no k.T relayout; f32 accumulation on the MXU
            s = lax.dot_general(qh, kh, (((1,), (1,)), ((), ())),
                                preferred_element_type=jnp.float32)  # (tq, tk)
            if apply_mask:
                s = jnp.where(keep, s, NEG_INF)

            m_prev = m_ref[h]                                          # (tq,128)
            m_new = jnp.maximum(m_prev, jnp.max(s, axis=-1, keepdims=True))
            alpha = jnp.exp(m_prev - m_new)                            # (tq,128)
            p = jnp.exp(s - _lane_fit(m_new, tk))                      # (tq, tk)

            l_ref[h] = alpha * l_ref[h] + jnp.sum(p, axis=-1, keepdims=True)

            vh = v_ref[0, 0, :, hs]                                    # (tk, hd)
            pv = lax.dot_general(p.astype(vh.dtype), vh,
                                 (((1,), (0,)), ((), ())),
                                 preferred_element_type=jnp.float32)   # (tq, hd)
            acc_ref[h] = _lane_fit(alpha, hd) * acc_ref[h] + pv
            m_ref[h] = m_new

    # Mask only diagonal-straddling tiles; interior tiles skip the iota/where.
    @pl.when(needed & straddles)
    def _masked():
        _process(True)

    @pl.when(needed & jnp.logical_not(straddles))
    def _unmasked():
        _process(False)

    @pl.when(kj == n_kv - 1)
    def _finalize():
        outs = []
        for h in range(n_heads):
            # approx=True moves the divide onto the EUP slot (v5e win); kept
            # exact by default for parity with the f32 reference.
            inv_l = _lane_fit(pl.reciprocal(l_ref[h], approx=approx_recip), hd)
            outs.append((acc_ref[h] * inv_l).astype(o_ref.dtype))
        # Single lane-dense (tq, D) store, already in the final (B, S, D) layout.
        o_ref[0] = jnp.concatenate(outs, axis=-1)


def _flash_attention(qkv, *, n_heads, tq, tk, past_length=0, approx_recip=False):
    three, B, S, D = qkv.shape
    assert three == 3 and D % n_heads == 0
    hd = D // n_heads
    assert S % tq == 0 and S % tk == 0
    n_q = S // tq
    n_kv = S // tk

    # Clamp the K/V block index for causally-skipped tiles: unchanged block
    # index across consecutive inner steps => Pallas issues no new DMA.
    def last_kv_block(i):
        return (i * tq + (tq - 1) + past_length) // tk

    q_spec = pl.BlockSpec((1, 1, tq, D), lambda b, i, j: (0, b, i, 0))
    k_spec = pl.BlockSpec(
        (1, 1, tk, D),
        lambda b, i, j: (1, b, jnp.minimum(j, last_kv_block(i)), 0))
    v_spec = pl.BlockSpec(
        (1, 1, tk, D),
        lambda b, i, j: (2, b, jnp.minimum(j, last_kv_block(i)), 0))
    o_spec = pl.BlockSpec((1, tq, D), lambda b, i, j: (b, i, 0))

    itemsize = jnp.dtype(qkv.dtype).itemsize
    flops = 2 * B * S * S * D                      # QK^T + PV, causal ~half
    bytes_accessed = itemsize * (2 * B * S * D + n_q * B * S * D)
    kernel = functools.partial(
        _flash_kernel, tq=tq, tk=tk, hd=hd, n_heads=n_heads,
        past_length=past_length, approx_recip=approx_recip)

    return pl.pallas_call(
        kernel,
        out_shape=jax.ShapeDtypeStruct((B, S, D), qkv.dtype),
        grid_spec=pltpu.PrefetchScalarGridSpec(
            num_scalar_prefetch=0,
            grid=(B, n_q, n_kv),
            in_specs=[q_spec, k_spec, v_spec],
            out_specs=o_spec,
            scratch_shapes=[
                pltpu.VMEM((n_heads, tq, LANES), jnp.float32),  # running max m
                pltpu.VMEM((n_heads, tq, LANES), jnp.float32),  # running denom l
                pltpu.VMEM((n_heads, tq, hd), jnp.float32),     # output acc
            ],
        ),
        compiler_params=pltpu.CompilerParams(
            dimension_semantics=("parallel", "parallel", "arbitrary"),
            vmem_limit_bytes=VMEM_LIMIT),
        cost_estimate=pl.CostEstimate(
            flops=flops, transcendentals=B * n_heads * S * S // 2,
            bytes_accessed=bytes_accessed),
    )(qkv, qkv, qkv)   # same array, three BlockSpec windows — no split copies


# ---------------------------------------------------------------------------
# Projection kernels: y = x @ W, optionally split into n_groups along N
# (used to emit the fused QKV result as (3, B, S, D) with no wrapper slicing).
# ---------------------------------------------------------------------------
def _proj_tiled_kernel(x_ref, w_ref, o_ref):
    # x_ref: (1, ts, Din)   w_ref: (Din, tn)   o_ref: (1, 1, ts, tn)
    o_ref[0, 0] = jnp.dot(
        x_ref[0], w_ref[...], preferred_element_type=jnp.float32
    ).astype(o_ref.dtype)


def _proj_full_kernel(x_ref, w_ref, o_ref, *, n_groups, ng):
    # x_ref: (1, ts, Din)   w_ref: (Din, N)   o_ref: (n_groups, 1, ts, ng)
    y = jnp.dot(x_ref[0], w_ref[...],
                preferred_element_type=jnp.float32).astype(o_ref.dtype)
    for g in range(n_groups):
        o_ref[g, 0] = y[:, g * ng:(g + 1) * ng]


def _pick_tn(ng, tn_req):
    """Largest multiple of 128 dividing `ng` that is <= max(tn_req, 128)."""
    if ng % 128 != 0:
        return None
    cand = max((min(tn_req, ng) // 128) * 128, 128)
    while ng % cand != 0:
        cand -= 128
    return cand


def _projection(x, w, *, ts, tn_req, n_groups=1):
    B, S, Din = x.shape
    Dw, N = w.shape
    assert Dw == Din and N % n_groups == 0 and S % ts == 0
    ng = N // n_groups
    itemsize = jnp.dtype(x.dtype).itemsize
    flops = 2 * B * S * Din * N

    tn = _pick_tn(ng, tn_req)
    if tn is None:
        # Toy / unaligned dims: full fused weight as one constant-index block,
        # scatter the (ts, N) result into n_groups outputs via static slices.
        kernel = functools.partial(_proj_full_kernel, n_groups=n_groups, ng=ng)
        grid = (B, S // ts)
        in_specs = [pl.BlockSpec((1, ts, Din), lambda b, i: (b, i, 0)),
                    pl.BlockSpec((Din, N), lambda b, i: (0, 0))]
        out_specs = pl.BlockSpec((n_groups, 1, ts, ng), lambda b, i: (0, b, i, 0))
        semantics = ("parallel", "parallel")
        bytes_accessed = itemsize * (B * S * Din + Din * N + B * S * N)
    else:
        # Real model dims: N-tiled weight blocks (never fully VMEM-resident,
        # v7x-safe). Grid order (n, b, s): each weight block DMA'd exactly once.
        # TODO(synk): K(=Din)-tiling with an f32 accumulator for very large D.
        g_blocks = ng // tn
        kernel = _proj_tiled_kernel
        grid = (n_groups * g_blocks, B, S // ts)
        in_specs = [pl.BlockSpec((1, ts, Din), lambda n, b, i: (b, i, 0)),
                    pl.BlockSpec((Din, tn), lambda n, b, i: (0, n))]
        out_specs = pl.BlockSpec(
            (1, 1, ts, tn), lambda n, b, i: (n // g_blocks, b, i, n % g_blocks))
        semantics = ("parallel", "parallel", "parallel")
        bytes_accessed = itemsize * (
            (n_groups * g_blocks) * B * S * Din + Din * N + B * S * N)

    return pl.pallas_call(
        kernel,
        out_shape=jax.ShapeDtypeStruct((n_groups, B, S, ng), x.dtype),
        grid_spec=pltpu.PrefetchScalarGridSpec(
            num_scalar_prefetch=0, grid=grid,
            in_specs=in_specs, out_specs=out_specs),
        compiler_params=pltpu.CompilerParams(
            dimension_semantics=semantics, vmem_limit_bytes=VMEM_LIMIT),
        cost_estimate=pl.CostEstimate(
            flops=flops, transcendentals=0, bytes_accessed=bytes_accessed),
    )(x, w)


# ---------------------------------------------------------------------------
# Full MHA forward
# ---------------------------------------------------------------------------
def prepare_mha_weights(wq, wk, wv, wo, n_heads):
    """Pre-transpose / fuse weights once at model load (hoisted out of the
    per-forward path): [Wq^T * 1/sqrt(hd), Wk^T, Wv^T] and Wo^T."""
    d_model = wq.shape[0]
    head_dim = d_model // n_heads
    scale = 1.0 / math.sqrt(head_dim)
    w_qkv = jnp.concatenate([wq.T * scale, wk.T, wv.T], axis=1)   # (D, 3D)
    return w_qkv, wo.T


def mha_forward_prepared(x, w_qkv, wo_t, n_heads, *,
                         block_q=256, block_k=256, block_s=256, block_n=512,
                         past_length=0, approx_reciprocal=False):
    # block_q/block_k: 256 targets the v6e/v7x 256x256 MXU; use 128-256 on v5e.
    B, S, D = x.shape
    assert D % n_heads == 0
    tq = min(block_q, S)
    tk = min(block_k, S)
    ts = min(block_s, S)
    assert S % tq == 0 and S % tk == 0 and S % ts == 0

    # 1) fused QKV projection -> (3, B, S, D); no wrapper split/transpose.
    qkv = _projection(x, w_qkv, ts=ts, tn_req=block_n, n_groups=3)
    # 2) flash attention (online softmax), output directly in (B, S, D).
    attn = _flash_attention(qkv, n_heads=n_heads, tq=tq, tk=tk,
                            past_length=past_length,
                            approx_recip=approx_reciprocal)
    # 3) output projection.
    return _projection(attn, wo_t, ts=ts, tn_req=block_n, n_groups=1)[0]


def mha_forward(x, wq, wk, wv, wo, n_heads, **kw):
    w_qkv, wo_t = prepare_mha_weights(wq, wk, wv, wo, n_heads)
    return mha_forward_prepared(x, w_qkv, wo_t, n_heads, **kw)


def mha_reference(x, wq, wk, wv, wo, n_heads):
    """Pure-JAX reference mirroring the PyTorch forward (eval mode)."""
    B, S, D = x.shape
    hd = D // n_heads
    q = (x @ wq.T).reshape(B, S, n_heads, hd).transpose(0, 2, 1, 3)
    k = (x @ wk.T).reshape(B, S, n_heads, hd).transpose(0, 2, 1, 3)
    v = (x @ wv.T).reshape(B, S, n_heads, hd).transpose(0, 2, 1, 3)
    scores = jnp.einsum('bhqd,bhkd->bhqk', q, k) / math.sqrt(hd)
    mask = jnp.triu(jnp.ones((S, S), bool), k=1)
    scores = jnp.where(mask[None, None], -jnp.inf, scores)
    w = jax.nn.softmax(scores, axis=-1)
    out = jnp.einsum('bhqk,bhkd->bhqd', w, v)
    out = out.transpose(0, 2, 1, 3).reshape(B, S, D)
    return out @ wo.T


if __name__ == "__main__":
    # Small, module-consistent shapes: batch=2, seq=8, d_model=32, n_heads=4
    B, S, D = 2, 8, 32
    n_heads = 4
    init_scale = 0.02

    key = jax.random.PRNGKey(0)
    kx, kq, kk, kv, ko = jax.random.split(key, 5)

    x = jax.random.normal(kx, (B, S, D), dtype=jnp.float32)
    wq = init_scale * jax.random.normal(kq, (D, D), dtype=jnp.float32)
    wk = init_scale * jax.random.normal(kk, (D, D), dtype=jnp.float32)
    wv = init_scale * jax.random.normal(kv, (D, D), dtype=jnp.float32)
    wo = init_scale * jax.random.normal(ko, (D, D), dtype=jnp.float32)

    # Weight fusion is done once, outside the per-forward path.
    w_qkv, wo_t = prepare_mha_weights(wq, wk, wv, wo, n_heads)

    out = mha_forward_prepared(x, w_qkv, wo_t, n_heads)
    out = jax.block_until_ready(out)

    ref = mha_reference(x, wq, wk, wv, wo, n_heads)
    np.testing.assert_allclose(np.asarray(out), np.asarray(ref),
                               rtol=1e-5, atol=1e-5)

    print("KERNEL_OK")
</pallas_src>

<mosaic_0001>
module attributes {stable_mosaic.version = 11 : i64} {
  func.func @_proj_full_kernel(%arg0: i32, %arg1: i32, %arg2: memref<1x8x32xf32, #tpu.memory_space<vmem>>, %arg3: memref<32x96xf32, #tpu.memory_space<vmem>>, %arg4: memref<3x1x8x32xf32, #tpu.memory_space<vmem>>) attributes {dimension_semantics = [#tpu.dimension_semantics<parallel>, #tpu.dimension_semantics<parallel>], iteration_bounds = array<i64: 2, 1>, scalar_prefetch = 0 : i64, scratch_operands = 0 : i64, tpu.core_type = #tpu.core_type<tc>, window_params = [{transform_indices = @transform_0, window_bounds = array<i64: 1, 8, 32>}, {pipeline_mode = #tpu.pipeline_mode<synchronous>, transform_indices = @transform_1, window_bounds = array<i64: 32, 96>}, {transform_indices = @transform_2, window_bounds = array<i64: 3, 1, 8, 32>}]} {
    %c0 = arith.constant 0 : index
    %c0_0 = arith.constant 0 : index
    %c0_1 = arith.constant 0 : index
    %0 = vector.load %arg2[%c0, %c0_0, %c0_1] : memref<1x8x32xf32, #tpu.memory_space<vmem>>, vector<1x8x32xf32>
    %1 = vector.shape_cast %0 : vector<1x8x32xf32> to vector<8x32xf32>
    %c0_2 = arith.constant 0 : index
    %c0_3 = arith.constant 0 : index
    %2 = vector.load %arg3[%c0_2, %c0_3] : memref<32x96xf32, #tpu.memory_space<vmem>>, vector<32x96xf32>
    %cst = arith.constant dense<0.000000e+00> : vector<8x96xf32>
    %3 = tpu.matmul %1, %2, %cst {dimension_numbers = #tpu.dot_dimension_numbers<[1], [0], [0], [1], [0, 0, 1, 1], [], []>} : vector<8x32xf32>, vector<32x96xf32>, vector<8x96xf32> -> vector<8x96xf32>
    %4 = vector.extract_strided_slice %3 {offsets = [0, 0], sizes = [8, 32], strides = [1, 1]} : vector<8x96xf32> to vector<8x32xf32>
    %c0_4 = arith.constant 0 : index
    %c0_5 = arith.constant 0 : index
    %c0_6 = arith.constant 0 : index
    %c0_7 = arith.constant 0 : index
    %5 = vector.load %arg4[%c0_4, %c0_5, %c0_6, %c0_7] : memref<3x1x8x32xf32, #tpu.memory_space<vmem>>, vector<1x1x8x32xf32>
    %6 = vector.shape_cast %5 : vector<1x1x8x32xf32> to vector<8x32xf32>
    %7 = vector.shape_cast %4 : vector<8x32xf32> to vector<1x1x8x32xf32>
    tpu.vector_store %arg4[%c0_4, %c0_5, %c0_6, %c0_7], %7 {strides = array<i32>} : memref<3x1x8x32xf32, #tpu.memory_space<vmem>>, vector<1x1x8x32xf32>,
    %8 = vector.extract_strided_slice %3 {offsets = [0, 32], sizes = [8, 32], strides = [1, 1]} : vector<8x96xf32> to vector<8x32xf32>
    %c1 = arith.constant 1 : index
    %c0_8 = arith.constant 0 : index
    %c0_9 = arith.constant 0 : index
    %c0_10 = arith.constant 0 : index
    %9 = vector.load %arg4[%c1, %c0_8, %c0_9, %c0_10] : memref<3x1x8x32xf32, #tpu.memory_space<vmem>>, vector<1x1x8x32xf32>
    %10 = vector.shape_cast %9 : vector<1x1x8x32xf32> to vector<8x32xf32>
    %11 = vector.shape_cast %8 : vector<8x32xf32> to vector<1x1x8x32xf32>
    tpu.vector_store %arg4[%c1, %c0_8, %c0_9, %c0_10], %11 {strides = array<i32>} : memref<3x1x8x32xf32, #tpu.memory_space<vmem>>, vector<1x1x8x32xf32>,
    %12 = vector.extract_strided_slice %3 {offsets = [0, 64], sizes = [8, 32], strides = [1, 1]} : vector<8x96xf32> to vector<8x32xf32>
    %c2 = arith.constant 2 : index
    %c0_11 = arith.constant 0 : index
    %c0_12 = arith.constant 0 : index
    %c0_13 = arith.constant 0 : index
    %13 = vector.load %arg4[%c2, %c0_11, %c0_12, %c0_13] : memref<3x1x8x32xf32, #tpu.memory_space<vmem>>, vector<1x1x8x32xf32>
    %14 = vector.shape_cast %13 : vector<1x1x8x32xf32> to vector<8x32xf32>
    %15 = vector.shape_cast %12 : vector<8x32xf32> to vector<1x1x8x32xf32>
    tpu.vector_store %arg4[%c2, %c0_11, %c0_12, %c0_13], %15 {strides = array<i32>} : memref<3x1x8x32xf32, #tpu.memory_space<vmem>>, vector<1x1x8x32xf32>,
    return
  }
  func.func @transform_0(%arg0: i32, %arg1: i32) -> (i32, i32, i32) {
    %c0_i32 = arith.constant 0 : i32
    %c0_i32_0 = arith.constant 0 : i32
    return %arg0, %arg1, %c0_i32 : i32, i32, i32
  }
  func.func @transform_1(%arg0: i32, %arg1: i32) -> (i32, i32) {
    %c0_i32 = arith.constant 0 : i32
    %c0_i32_0 = arith.constant 0 : i32
    %c0_i32_1 = arith.constant 0 : i32
    return %c0_i32, %c0_i32_0 : i32, i32
  }
  func.func @transform_2(%arg0: i32, %arg1: i32) -> (i32, i32, i32, i32) {
    %c0_i32 = arith.constant 0 : i32
    %c0_i32_0 = arith.constant 0 : i32
    %c0_i32_1 = arith.constant 0 : i32
    return %c0_i32, %arg0, %arg1, %c0_i32_0 : i32, i32, i32, i32
  }
}

</mosaic_0001>

<bundles_post_ra>
// kernel: tpu_custom_call.1
= control target key start
LH: loop header
LB: loop body
LE: loop exit
PB: predicated region body
PF: predicated region fallthrough
CT: control target
= control target key end

     0   :  { %7 = vsyncpa [#allocation3], 0  ;;  %s857_s0 = inlined_call_operand.hbm [shape: f32[2,8,32], index: 0, kind: input, shape index: {}]   ;;  %s858_s1 = inlined_call_operand.hbm [shape: f32[32,96], index: 1, kind: input, shape index: {}]   ;;  %s859_s2 = inlined_call_operand.hbm [shape: f32[3,2,8,32], index: 2, kind: output, shape index: {}]  }
   0x1   :  { %9 = vsyncpa [#allocation3 + $0x1], 0 }
   0x2   :  { %10 = vsyncpa [#allocation6], 0 }
   0x3   :  { %11 = vsyncpa [#allocation4], 0 }
   0x4   :  { %13 = vsyncpa [#allocation4 + $0x1], 0  ;;  %s671_s9 = smov 0   ;;  %s673_s10 = smov 0  }
   0x5   :  { %s675_s11 = smov 0   ;;  %s677_s12 = smov 0  }
   0x6   :  { %s679_s13 = smov 0   ;;  %s681_s14 = smov 0  }
   0x7 LB: > { %s389_s15 = sadd.s32 4294967295, %s642_s14   ;;  %s390_s16 = sadd.s32 4294967294, %s642_s14   ;;  %s642_s14 = sphi %s681_s14, %s19_s14   ;;  %s638_s13 = sphi %s679_s13, %s877_s13   ;;  %s634_s12 = sphi %s677_s12, %s876_s12   ;;  %s630_s11 = sphi %s675_s11, %s875_s11   ;;  %s626_s10 = sphi %s673_s10, %s874_s10   ;;  %s622_s9 = sphi %s671_s9, %s873_s9  }
   0x8   : > { %p53_p0 = scmp.ne.s32.totalorder %s626_s10, %s622_s9  ;;  %p705_p1 = scmp.eq.s32.totalorder %s389_s15, 0 }
   0x9   : > { %p709_p2 = scmp.eq.s32.totalorder %s389_s15, 1  ;;  %p106_p3 = scmp.eq.s32.totalorder %s390_s16, 1 }
   0xa   : > { %p715_p4 = por %p705_p1, %p53_p0  ;;  %p391_p5 = scmp.ge.s32.totalorder %s642_s14, 1 }
   0xb   : > { %p720_p6 = por %p106_p3, %p53_p0  ;;  %p113_p7 = scmp.lt.s32.totalorder %s642_s14, 3 }
   0xc   : > { %s863_s19 = scalar_select %p715_p4, 1, 0 }
   0xd   : > { %s864_s20 = scalar_select %p720_p6, 1, 0 }
   0xe   : > { %p725_p8 = pnand %p391_p5, %p113_p7  ;;  %s644_s22 = smov [#allocation5]  }
   0xf   : > { %s125_s23 = sshll.u32 %s644_s22, 4  ;;  %s31_s25 = sadd.s32 1, %s638_s13  ;;  %s126_s23 = int_to_ptr.vmem [resolvable:$true] %s125_s23 }
  0x10   : > { %p430_p9 = pneg %p725_p8  ;;  %s515_s26 = scalar_lea.vmem %s126_s23, 512 }
  0x11   : > { %p516_p13 = scmp.ne.s32.totalorder %s126_s23, %s515_s26  ;;  %p523_p5 = scmp.lt.s32.totalorder %s126_s23, %s126_s23 }
  0x12   : > { %p734_p11 = pnand %p430_p9, %p705_p1  ;;  %p524_p7 = scmp.lt.s32.totalorder %s515_s26, %s515_s26 }
  0x14   : > { %p506_p12 = pneg %p734_p11  ;;  %p525_p6 = por %p524_p7, %p523_p5 }
  0x16   : > { %p518_p0 = pnand %p516_p13, %p506_p12 }
  0x18   : > { %p519_p3 = pneg %p518_p0 }
  0x1a   : > { %p526_p4 = pnand %p525_p6, %p519_p3 }
  0x1c   : > { %529 = shalt.err (!%p526_p4)
}
  0x1d   : > { %s645_s27 = smov 128   ;;  %s646_s28 = smov 8  }
  0x1e   : > { %433 = dma.hbm_to_vmem [thread:$0]  (!%p734_p11), %s858_s1, 512, %s126_s23, [#allocation6], %s645_s27, %s645_s27, %s646_s28  }
  0x1f   : > { %p33_p6 = scmp.ge.s32.totalorder %s31_s25, 2  ;;  %s40_s3 = sadd.s32 1, %s630_s11 }
  0x20   : > { %p47_p4 = scmp.ne.s32.totalorder %s630_s11, %s626_s10  ;;  %p48_p9 = scmp.eq.s32.totalorder %s642_s14, 0 }
  0x21   : > { %s879_s25 = smov (%p33_p6, %s31_s25), 0  ;;  %p443_p0 = scmp.lt.s32.totalorder %s642_s14, 2 }
  0x22   : > { %p752_p12 = por %p48_p9, %p47_p4  ;;  %p758_p13 = por %p709_p2, %p47_p4 }
  0x23   : > { %s35_s6 = ssub.s32 %s638_s13, %s879_s25  ;;  %s139_s7 = sand.u32 1, %s630_s11  }
  0x24   : > { %p38_p11 = scmp.eq.s32.totalorder %s35_s6, 0  ;;  %s394_s8 = sshll.u32 %s139_s7, 3 }
  0x25   : > { %s395_s16 = sshll.u32 %s638_s13, 7  ;;  %s143_s26 = scalar_lea.vmem [#allocation2], %s394_s8 }
  0x26   : > { %s767_s15 = scalar_select %p38_p11, %s630_s11, %s40_s3  }
  0x27   : > { %s149_s24 = scalar_lea.hbm %s857_s0, %s395_s16  ;;  %s151_s27 = sshll.u32 %s143_s26, 4  ;;  %s152_s27 = int_to_ptr.vmem [resolvable:$true] %s151_s27 }
  0x28   : > { %p775_p2 = pnand %p443_p0, %p752_p12  ;;  %s140_s28 = scalar_lea.sflag [#allocation3], %s139_s7 }
  0x29   : > { %s543_s29 = scalar_lea.vmem %s152_s27, 128  ;;  %s647_s30 = smov [#allocation2]  }
  0x2a   : > { %p532_p3 = pneg %p775_p2  ;;  %p544_p5 = scmp.ne.s32.totalorder %s152_s27, %s543_s29 }
  0x2b   : > { %s548_s3 = sshll.u32 %s647_s30, 4  ;;  %s549_s3 = int_to_ptr.vmem [resolvable:$false] %s548_s3 }
  0x2c   : > { %p546_p7 = pnand %p544_p5, %p532_p3  ;;  %s550_s6 = scalar_lea.vmem %s549_s3, 256 }
  0x2d   : > { %p551_p4 = scmp.lt.s32.totalorder %s152_s27, %s549_s3  ;;  %p552_p9 = scmp.lt.s32.totalorder %s550_s6, %s543_s29 }
  0x2e   : > { %p547_p6 = pneg %p546_p7 }
  0x2f   : > { %p553_p11 = por %p552_p9, %p551_p4 }
  0x31   : > { %p554_p10 = pnand %p553_p11, %p547_p6 }
  0x33   : > { %557 = shalt.err (!%p554_p10)
}
  0x34   : > { %437 = dma.hbm_to_vmem [thread:$0]  (!%p775_p2), %s149_s24, 128, %s152_s27, %s140_s28  }
  0x35   : > { %160 = sbr.rel (%p725_p8) target bundleno = 397 (0x18d), region = 28  ;;  %s786_s4 = sand.u32 (!%p725_p8), 1, %s626_s10  }
  0x36   : > { %s397_s7 = sshll.u32 (!%p725_p8), %s786_s4, 3  ;;  %s163_s8 = scalar_lea.sflag (!%p725_p8), [#allocation3], %s786_s4 }
  0x37   : > { %s166_s16 = scalar_lea.vmem (!%p725_p8), [#allocation2], %s397_s7  ;;  %p870_p12 = scmp.ne.s32.totalorder (!%p725_p8), %s863_s19, 0 }
  0x3a   : > { %609 = dma.done.wait (%p870_p12), %s163_s8, 128  }
  0x3b   : > { %611 = vsyncadd (%p870_p12), %s163_s8, 4294967168 }
  0x3c   : > { %613 = dma.done.wait (%p705_p1), [#allocation6], 512  }
  0x3d   : > { %615 = vsyncadd (%p705_p1), [#allocation6], 4294966784  ;;  %v648_v0 = vmov 0.0   ;;  %vm649_vm0 = vmmov 0   ;;  %v195_v1 = vld [vmem:[#allocation5 + $0x18] sm:$0xff]  ;;  %v194_v2 = vld [vmem:[#allocation5 + $0x10] sm:$0xff] }
  0x3e   : > { %410 = vmatprep.subr.mxu0 %v648_v0  ;;  %418 = vmatprep.mubr.msk.f32.mxu0 %vm649_vm0, %v648_v0  ;;  %v193_v3 = vld [vmem:[#allocation5 + $0x8] sm:$0xff]  ;;  %v192_v4 = vld [vmem:[#allocation5] sm:$0xff]  ;;  %v191_v5 = vld [vmem:[%s166_s16] sm:$0xff]  ;;  %vm196_vm1 = vcmask 261120   ;;  %s421_s17 = smul.u32 24, %s786_s4  ;;  %s650_s21 = smov 96  }
  0x3f   : > { %411 = vmatpush3.msra.mxu0 %v195_v1  ;;  %s651_s22 = smov 64   ;;  %s402_s24 = sshll.u32 %s634_s12, 7 }
  0x40   : > { %412 = vmatprep.subr.mxu0 %v648_v0  ;;  %s190_s19 = scalar_lea.vmem [#allocation7], %s421_s17  ;;  %s808_s18 = scalar_lea.hbm %s859_s2, %s402_s24 }
  0x41   : > { %413 = vmatpush3.msra.mxu0 %v194_v2  ;;  %s296_s23 = sshll.u32 %s190_s19, 4  ;;  %s283_s28 = scalar_lea.sflag [#allocation4], %s786_s4  ;;  %s802_s23 = int_to_ptr.vmem [resolvable:$true] %s296_s23 }
  0x42   : > { %414 = vmatprep.subr.mxu0 %v648_v0  ;;  %s558_s29 = scalar_lea.vmem %s802_s23, 384  ;;  %s652_s12 = smov [#allocation7]  }
  0x43   : > { %415 = vmatpush3.msra.mxu0 %v193_v3  ;;  %p559_p1 = scmp.ne.s32.totalorder %s802_s23, %s558_s29  ;;  %s562_s30 = sshll.u32 %s652_s12, 4  ;;  %s563_s30 = int_to_ptr.vmem [resolvable:$false] %s562_s30 }
  0x44   : > { %416 = vmatprep.subr.mxu0 %v648_v0  ;;  %s564_s3 = scalar_lea.vmem %s563_s30, 768  ;;  %p565_p0 = scmp.lt.s32.totalorder %s802_s23, %s563_s30 }
  0x45   : > { %417 = vmatpush3.msra.mxu0 %v192_v4  ;;  %p560_p8 = pnand %p559_p1, %p758_p13  ;;  %p566_p2 = scmp.lt.s32.totalorder %s564_s3, %s558_s29 }
  0x46   : > { %419 = vmatmul.mubr.msk.f32.vlgmr.msra.gmra.mxu0 %vm196_vm1, %v191_v5 }
  0x47   : > { %p561_p10 = pneg %p560_p8  ;;  %p567_p3 = por %p566_p2, %p565_p0 }
  0x49   : > { %p568_p5 = pnand %p567_p3, %p561_p10 }
 0x106   : > { %v266_v6 = vpop.f32.mrf.mxu0 }
 0x107   : > { %270 = vst.msk [vmem:[%s190_s19] sm:$0xff] %vm196_vm1, %v266_v6  ;;  %272 = vrot.lane.b32.xlu0 %v266_v6, %s650_s21 }
 0x108   : > { %v420_v7 = vpop.f32.mrf.mxu0 }
 0x10b   : > { %277 = vrot.lane.b32.xlu0 %v266_v6, %s651_s22 }
 0x179   : > { %v273_v8 = vpop.permute.xlu0 %272 }
 0x17a   : > { %400 = vst.msk [vmem:[%s190_s19 + $0x8] sm:$0xff] %vm196_vm1, %v273_v8 }
 0x17d   : > { %v278_v9 = vpop.permute.xlu0 %277 }
 0x17e   : > { %401 = vst.msk [vmem:[%s190_s19 + $0x10] sm:$0xff] %vm196_vm1, %v278_v9 }
 0x17f   : > { %571 = shalt.err (!%p568_p5)
}
 0x180   : > { %s572_s6 = scalar_lea.hbm %s808_s18, 384  ;;  %s576_s16 = scalar_lea.hbm %s859_s2, 768 }
 0x181   : > { %p573_p7 = scmp.ne.s32.totalorder %s808_s18, %s572_s6  ;;  %p577_p9 = scmp.lt.s32.totalorder %s808_s18, %s859_s2 }
 0x182   : > { %p578_p11 = scmp.lt.s32.totalorder %s576_s16, %s572_s6 }
 0x183   : > { %p574_p6 = pnand %p573_p7, %p758_p13 }
 0x184   : > { %p579_p12 = por %p578_p11, %p577_p9 }
 0x185   : > { %p575_p4 = pneg %p574_p6 }
 0x187   : > { %p580_p1 = pnand %p579_p12, %p575_p4 }
 0x189   : > { %583 = shalt.err (!%p580_p1)
}
 0x18a   : > { %s653_s21 = smov 128   ;;  %s654_s22 = smov 256  }
 0x18b   : > { %s655_s24 = smov 8  }
 0x18c   : > { %428 = dma.vmem_to_hbm [thread:$0]  (%p758_p13), %s802_s23, 384, %s808_s18, %s283_s28, %s653_s21, %s654_s22, %s655_s24  }
 0x18d PF: > { %s311_s26 = sand.u32 1, %s622_s9   ;;  %p871_p8 = scmp.ne.s32.totalorder %s864_s20, 0 }
 0x18e   : > { %p872_p10 = scmp.ge.s32.totalorder %s642_s14, 2  ;;  %s312_s27 = scalar_lea.sflag [#allocation4], %s311_s26 }
 0x190   : > { %p439_p0 = pnand %p872_p10, %p871_p8 }
 0x192   : > { %p440_p2 = pneg %p439_p0 }
 0x194   : > { %617 = dma.done.wait (%p440_p2), %s312_s27, 384  }
 0x195   : > { %619 = vsyncadd (%p440_p2), %s312_s27, 4294966912  ;;  %s19_s14 = sadd.s32 1, %s642_s14   ;;  %s873_s9 = smov %s626_s10 }
 0x196   : > { %p16_p3 = scmp.ge.s32.totalorder %s19_s14, 4   ;;  %s874_s10 = smov %s630_s11 }
 0x197   : > { %s875_s11 = smov %s767_s15  ;;  %s876_s12 = smov %s638_s13 }
 0x198   : > { %s877_s13 = smov %s879_s25  ;;  %18 = sbr.rel (!%p16_p3) target bundleno = 7 (0x7), region = 79 }
 0x19d   :  { %317 = vsyncpa [#allocation3], 1 }
 0x19e   :  { %319 = vsyncpa [#allocation3 + $0x1], 1 }
 0x19f   :  { %320 = vsyncpa [#allocation6], 1 }
 0x1a0   :  { %321 = vsyncpa [#allocation4], 1 }
 0x1a1   :  { %323 = vsyncpa [#allocation4 + $0x1], 1 }

</bundles_post_ra>
